<compile_context>
chip_gen: v5e
topology: v5e:2x2
jax: 0.10.0
libtpu: 0.0.40
codegen_flags: <defaults>
</compile_context>

<pallas_src>
import functools

import jax
import jax.numpy as jnp
from jax.experimental import pallas as pl
from jax.experimental.pallas import tpu as pltpu

LANE = 128
SUBLANE = 8
TILE_BYTES = 2 << 20          # ~2 MiB tiles (in the input dtype)
VMEM_LIMIT_BYTES = 32 << 20   # explicit scoped-VMEM limit, safe on v5e/v6e/v7x


# ---------------- kernels ----------------

def _minmax_kernel(x_ref, min_ref, max_ref, *, n_rows, tile_rows, need_mask):
    """Streaming min/max: (8,128) elementwise accumulators in the resident output."""
    i = pl.program_id(0)

    @pl.when(i == 0)
    def _():
        min_ref[...] = jnp.full(min_ref.shape, jnp.inf, min_ref.dtype)
        max_ref[...] = jnp.full(max_ref.shape, -jnp.inf, max_ref.dtype)

    x = x_ref[...].astype(jnp.float32)              # cast in-kernel (DMA in input dtype)
    if need_mask:
        # Ragged last row-tile: rows past n_rows hold unspecified (Pallas-padded)
        # data -> neutralize with +/-inf so min/max stay exact.
        row = jax.lax.broadcasted_iota(jnp.int32, x.shape, 0)
        valid = (i * tile_rows + row) < n_rows
        x_lo = jnp.where(valid, x, jnp.inf)
        x_hi = jnp.where(valid, x, -jnp.inf)
    else:
        x_lo = x
        x_hi = x
    # Sublane regrouping (no data movement) -> axis-0 reduce is pure VPU.
    x_lo = x_lo.reshape(tile_rows // SUBLANE, SUBLANE, LANE)
    x_hi = x_hi.reshape(tile_rows // SUBLANE, SUBLANE, LANE)
    min_ref[...] = jnp.minimum(min_ref[...], jnp.min(x_lo, axis=0))
    max_ref[...] = jnp.maximum(max_ref[...], jnp.max(x_hi, axis=0))


def _fq_sigmoid_fq_kernel(qp_ref, x_ref, out_ref, *, qmax):
    """Fused fake-quant(x, qi) -> sigmoid -> fake-quant(y, qo).

    qp layout (SMEM, scalar-prefetched):
      [inv_scale_i, zp_i, scale_i, off_i, inv_scale_o, zp_o, scale_o, off_o]
      with off = -scale * zp (fused dequant offset).
    """
    inv_scale_i = qp_ref[0]
    zp_i = qp_ref[1]
    scale_i = qp_ref[2]
    off_i = qp_ref[3]
    inv_scale_o = qp_ref[4]
    zp_o = qp_ref[5]
    scale_o = qp_ref[6]
    off_o = qp_ref[7]

    x = x_ref[...].astype(jnp.float32)
    qx = jnp.round(jnp.clip(zp_i + x * inv_scale_i, 0.0, qmax))
    y = jax.nn.sigmoid(qx * scale_i + off_i)        # == scale_i * (qx - zp_i), EUP sigmoid
    qy = jnp.round(jnp.clip(zp_o + y * inv_scale_o, 0.0, qmax))
    out_ref[...] = (qy * scale_o + off_o).astype(out_ref.dtype)


# ---------------- glue (plain JAX, tiny scalar math) ----------------

def _calc_scale_zero_point(min_val, max_val, qmax):
    # Mirrors calcScaleZeroPoint (clip then round; round-half-to-even == torch.round).
    scale = (max_val - min_val) / qmax
    zero_point = jnp.round(jnp.clip(qmax - max_val / scale, 0.0, qmax))
    return scale, zero_point


@functools.partial(jax.jit, static_argnames=("num_bits",))
def qsigmoid_forward(x, num_bits=8):
    qmax = 2.0 ** num_bits - 1.0
    orig_shape = x.shape
    orig_dtype = x.dtype

    flat = x.reshape(-1)                            # free (contiguous view)
    n = flat.shape[0]
    if n == 0:
        return x

    # ---- lane-dense slab (zero-copy when n % 128 == 0, the common case) ----
    rem = n % LANE
    if rem:
        # TODO(synk): lane-ragged tails still cost a pad + slice pass; a 1-D block
        # layout with in-kernel lane masking would remove these as well.
        flat = jnp.pad(flat, (0, LANE - rem), mode="edge")   # edge keeps min/max exact
    n_rows = flat.shape[0] // LANE
    x2d = flat.reshape(n_rows, LANE)

    # ---- static tile selection: ~2 MiB tiles in the input dtype ----
    itemsize = jnp.dtype(orig_dtype).itemsize
    max_tile_rows = max(SUBLANE, (TILE_BYTES // (LANE * itemsize)) // SUBLANE * SUBLANE)
    rows_up8 = ((n_rows + SUBLANE - 1) // SUBLANE) * SUBLANE
    tile_rows = min(max_tile_rows, rows_up8)
    num_tiles = -(-n_rows // tile_rows)
    need_mask = (num_tiles * tile_rows) != n_rows   # ragged last row-tile

    tile_spec = pl.BlockSpec((tile_rows, LANE), lambda i: (i, 0))
    slab_spec = pl.BlockSpec((SUBLANE, LANE), lambda i: (0, 0))
    slab_shape = jax.ShapeDtypeStruct((SUBLANE, LANE), jnp.float32)

    # ---- K1: global min/max of x (single streaming pass, input dtype DMA) ----
    min_slab, max_slab = pl.pallas_call(
        functools.partial(_minmax_kernel, n_rows=n_rows, tile_rows=tile_rows,
                          need_mask=need_mask),
        out_shape=(slab_shape, slab_shape),
        grid=(num_tiles,),
        in_specs=[tile_spec],
        out_specs=(slab_spec, slab_spec),
        compiler_params=pltpu.CompilerParams(
            dimension_semantics=("arbitrary",),
            vmem_limit_bytes=VMEM_LIMIT_BYTES),
    )(x2d)

    x_min = jnp.min(min_slab)
    x_max = jnp.max(max_slab)

    # ---- qi statistics (QParam.update semantics) ----
    # NOTE: like the PyTorch reference, an all-zero input gives scale == 0 -> NaN.
    xi_min = jnp.minimum(x_min, 0.0)
    xi_max = jnp.maximum(x_max, 0.0)
    scale_i, zp_i = _calc_scale_zero_point(xi_min, xi_max, qmax)
    inv_scale_i = 1.0 / scale_i
    off_i = -scale_i * zp_i

    # ---- qo statistics analytically (fq and sigmoid are monotone) ----
    # Same arithmetic as the fused kernel (multiply by inv_scale, fused offset).
    def _fq_i(v):
        q = jnp.round(jnp.clip(zp_i + v * inv_scale_i, 0.0, qmax))
        return q * scale_i + off_i

    y_min = jax.nn.sigmoid(_fq_i(x_min))
    y_max = jax.nn.sigmoid(_fq_i(x_max))
    yo_min = jnp.minimum(y_min, 0.0)                # sigmoid > 0 -> clamps to 0
    yo_max = jnp.maximum(y_max, 0.0)
    scale_o, zp_o = _calc_scale_zero_point(yo_min, yo_max, qmax)
    inv_scale_o = 1.0 / scale_o
    off_o = -scale_o * zp_o

    qp = jnp.stack([inv_scale_i, zp_i, scale_i, off_i,
                    inv_scale_o, zp_o, scale_o, off_o]).astype(jnp.float32)

    # ---- K2 (fused): fq(x, qi) -> sigmoid -> fq(., qo), one elementwise pass ----
    out2d = pl.pallas_call(
        functools.partial(_fq_sigmoid_fq_kernel, qmax=qmax),
        out_shape=jax.ShapeDtypeStruct((n_rows, LANE), orig_dtype),
        grid_spec=pltpu.PrefetchScalarGridSpec(
            num_scalar_prefetch=1,
            grid=(num_tiles,),
            in_specs=[pl.BlockSpec((tile_rows, LANE), lambda i, qp: (i, 0))],
            out_specs=pl.BlockSpec((tile_rows, LANE), lambda i, qp: (i, 0))),
        compiler_params=pltpu.CompilerParams(
            dimension_semantics=("parallel",),
            vmem_limit_bytes=VMEM_LIMIT_BYTES),
    )(qp, x2d)

    out_flat = out2d.reshape(-1)                    # free (same layout)
    if rem:
        out_flat = out_flat[:n]
    return out_flat.reshape(orig_shape)


# ---------------- pure-JAX reference (mirrors the PyTorch forward) ----------------

def _reference_forward(x, num_bits=8):
    qmax = 2.0 ** num_bits - 1.0
    x = x.astype(jnp.float32)
    x_max = jnp.maximum(jnp.max(x), 0.0)
    x_min = jnp.minimum(jnp.min(x), 0.0)
    scale = (x_max - x_min) / qmax
    zp = jnp.round(jnp.clip(qmax - x_max / scale, 0.0, qmax))
    xq = scale * (jnp.round(jnp.clip(zp + x / scale, 0.0, qmax)) - zp)
    y = jax.nn.sigmoid(xq)
    y_max = jnp.maximum(jnp.max(y), 0.0)
    y_min = jnp.minimum(jnp.min(y), 0.0)
    scale_o = (y_max - y_min) / qmax
    zp_o = jnp.round(jnp.clip(qmax - y_max / scale_o, 0.0, qmax))
    return scale_o * (jnp.round(jnp.clip(zp_o + y / scale_o, 0.0, qmax)) - zp_o)


if __name__ == "__main__":
    key = jax.random.PRNGKey(0)
    # NCHW input, as a PyTorch conv-style activation would be
    x = jax.random.normal(key, (2, 4, 16, 16), dtype=jnp.float32) * 3.0

    out = qsigmoid_forward(x, num_bits=8)
    out = jax.block_until_ready(out)

    assert out.shape == x.shape and out.dtype == x.dtype
    assert bool(jnp.all(jnp.isfinite(out)))
    assert bool(jnp.all((out >= 0.0) & (out <= 1.0 + 1e-3)))

    # Loose-tolerance check vs the divide-based / two-pass reference: the kernel
    # quantizes with x * (1/scale) and uses analytical qo stats, which can shift
    # rare boundary elements by one quantization step.
    ref = _reference_forward(x, num_bits=8)
    assert bool(jnp.max(jnp.abs(out.astype(jnp.float32) - ref)) < 5e-2)

    print("KERNEL_OK")
</pallas_src>

<mosaic_0001>
module attributes {stable_mosaic.version = 11 : i64} {
  func.func @_minmax_kernel(%arg0: i32, %arg1: memref<16x128xf32, #tpu.memory_space<vmem>>, %arg2: memref<8x128xf32, #tpu.memory_space<vmem>>, %arg3: memref<8x128xf32, #tpu.memory_space<vmem>>) attributes {dimension_semantics = [#tpu.dimension_semantics<arbitrary>], iteration_bounds = array<i64: 1>, scalar_prefetch = 0 : i64, scratch_operands = 0 : i64, tpu.core_type = #tpu.core_type<tc>, window_params = [{transform_indices = @transform_0, window_bounds = array<i64: 16, 128>}, {pipeline_mode = #tpu.pipeline_mode<synchronous>, transform_indices = @transform_1, window_bounds = array<i64: 8, 128>}, {pipeline_mode = #tpu.pipeline_mode<synchronous>, transform_indices = @transform_2, window_bounds = array<i64: 8, 128>}]} {
    %c0_i32 = arith.constant 0 : i32
    %0 = arith.cmpi eq, %arg0, %c0_i32 : i32
    %1 = arith.extui %0 : i1 to i32
    %c0_i32_0 = arith.constant 0 : i32
    %2 = arith.cmpi ne, %1, %c0_i32_0 : i32
    scf.if %2 {
      %cst_11 = arith.constant 0x7F800000 : f32
      %14 = vector.broadcast %cst_11 : f32 to vector<8x128xf32>
      %c0_12 = arith.constant 0 : index
      %c0_13 = arith.constant 0 : index
      %15 = vector.load %arg2[%c0_12, %c0_13] : memref<8x128xf32, #tpu.memory_space<vmem>>, vector<8x128xf32>
      tpu.vector_store %arg2[%c0_12, %c0_13], %14 {strides = array<i32>} : memref<8x128xf32, #tpu.memory_space<vmem>>, vector<8x128xf32>,
      %cst_14 = arith.constant 0xFF800000 : f32
      %16 = vector.broadcast %cst_14 : f32 to vector<8x128xf32>
      %c0_15 = arith.constant 0 : index
      %c0_16 = arith.constant 0 : index
      %17 = vector.load %arg3[%c0_15, %c0_16] : memref<8x128xf32, #tpu.memory_space<vmem>>, vector<8x128xf32>
      tpu.vector_store %arg3[%c0_15, %c0_16], %16 {strides = array<i32>} : memref<8x128xf32, #tpu.memory_space<vmem>>, vector<8x128xf32>,
    } else {
    }
    %c0 = arith.constant 0 : index
    %c0_1 = arith.constant 0 : index
    %3 = vector.load %arg1[%c0, %c0_1] : memref<16x128xf32, #tpu.memory_space<vmem>>, vector<16x128xf32>
    %4 = vector.shape_cast %3 : vector<16x128xf32> to vector<2x8x128xf32>
    %5 = vector.shape_cast %3 : vector<16x128xf32> to vector<2x8x128xf32>
    %c0_2 = arith.constant 0 : index
    %c0_3 = arith.constant 0 : index
    %6 = vector.load %arg2[%c0_2, %c0_3] : memref<8x128xf32, #tpu.memory_space<vmem>>, vector<8x128xf32>
    %cst = arith.constant dense<0x7F800000> : vector<8x128xf32>
    %7 = vector.multi_reduction <minimumf>, %4, %cst [0] : vector<2x8x128xf32> to vector<8x128xf32>
    %8 = arith.minimumf %6, %7 : vector<8x128xf32>
    %c0_4 = arith.constant 0 : index
    %c0_5 = arith.constant 0 : index
    %9 = vector.load %arg2[%c0_4, %c0_5] : memref<8x128xf32, #tpu.memory_space<vmem>>, vector<8x128xf32>
    tpu.vector_store %arg2[%c0_4, %c0_5], %8 {strides = array<i32>} : memref<8x128xf32, #tpu.memory_space<vmem>>, vector<8x128xf32>,
    %c0_6 = arith.constant 0 : index
    %c0_7 = arith.constant 0 : index
    %10 = vector.load %arg3[%c0_6, %c0_7] : memref<8x128xf32, #tpu.memory_space<vmem>>, vector<8x128xf32>
    %cst_8 = arith.constant dense<0xFF800000> : vector<8x128xf32>
    %11 = vector.multi_reduction <maximumf>, %5, %cst_8 [0] : vector<2x8x128xf32> to vector<8x128xf32>
    %12 = arith.maximumf %10, %11 : vector<8x128xf32>
    %c0_9 = arith.constant 0 : index
    %c0_10 = arith.constant 0 : index
    %13 = vector.load %arg3[%c0_9, %c0_10] : memref<8x128xf32, #tpu.memory_space<vmem>>, vector<8x128xf32>
    tpu.vector_store %arg3[%c0_9, %c0_10], %12 {strides = array<i32>} : memref<8x128xf32, #tpu.memory_space<vmem>>, vector<8x128xf32>,
    return
  }
  func.func @transform_0(%arg0: i32) -> (i32, i32) {
    %c0_i32 = arith.constant 0 : i32
    %c0_i32_0 = arith.constant 0 : i32
    return %arg0, %c0_i32 : i32, i32
  }
  func.func @transform_1(%arg0: i32) -> (i32, i32) {
    %c0_i32 = arith.constant 0 : i32
    %c0_i32_0 = arith.constant 0 : i32
    %c0_i32_1 = arith.constant 0 : i32
    return %c0_i32, %c0_i32_0 : i32, i32
  }
  func.func @transform_2(%arg0: i32) -> (i32, i32) {
    %c0_i32 = arith.constant 0 : i32
    %c0_i32_0 = arith.constant 0 : i32
    %c0_i32_1 = arith.constant 0 : i32
    return %c0_i32, %c0_i32_0 : i32, i32
  }
}

module attributes {stable_mosaic.version = 11 : i64} {
  func.func @_fq_sigmoid_fq_kernel(%arg0: i32, %arg1: memref<8xf32, #tpu.memory_space<smem>>, %arg2: memref<16x128xf32, #tpu.memory_space<vmem>>, %arg3: memref<16x128xf32, #tpu.memory_space<vmem>>) attributes {dimension_semantics = [#tpu.dimension_semantics<parallel>], iteration_bounds = array<i64: 1>, scalar_prefetch = 1 : i64, scratch_operands = 0 : i64, tpu.core_type = #tpu.core_type<tc>, window_params = [{transform_indices = @transform_0, window_bounds = array<i64: 16, 128>}, {transform_indices = @transform_1, window_bounds = array<i64: 16, 128>}]} {
    %c0 = arith.constant 0 : index
    %0 = memref.load %arg1[%c0] : memref<8xf32, #tpu.memory_space<smem>>
    %c1 = arith.constant 1 : index
    %1 = memref.load %arg1[%c1] : memref<8xf32, #tpu.memory_space<smem>>
    %c2 = arith.constant 2 : index
    %2 = memref.load %arg1[%c2] : memref<8xf32, #tpu.memory_space<smem>>
    %c3 = arith.constant 3 : index
    %3 = memref.load %arg1[%c3] : memref<8xf32, #tpu.memory_space<smem>>
    %c4 = arith.constant 4 : index
    %4 = memref.load %arg1[%c4] : memref<8xf32, #tpu.memory_space<smem>>
    %c5 = arith.constant 5 : index
    %5 = memref.load %arg1[%c5] : memref<8xf32, #tpu.memory_space<smem>>
    %c6 = arith.constant 6 : index
    %6 = memref.load %arg1[%c6] : memref<8xf32, #tpu.memory_space<smem>>
    %c7 = arith.constant 7 : index
    %7 = memref.load %arg1[%c7] : memref<8xf32, #tpu.memory_space<smem>>
    %c0_0 = arith.constant 0 : index
    %c0_1 = arith.constant 0 : index
    %8 = vector.load %arg2[%c0_0, %c0_1] : memref<16x128xf32, #tpu.memory_space<vmem>>, vector<16x128xf32>
    %9 = vector.broadcast %0 : f32 to vector<16x128xf32>
    %10 = arith.mulf %8, %9 : vector<16x128xf32>
    %11 = vector.broadcast %1 : f32 to vector<16x128xf32>
    %12 = arith.addf %11, %10 : vector<16x128xf32>
    %cst = arith.constant 0.000000e+00 : f32
    %cst_2 = arith.constant 2.550000e+02 : f32
    %13 = vector.broadcast %cst : f32 to vector<16x128xf32>
    %14 = arith.maximumf %13, %12 : vector<16x128xf32>
    %15 = vector.broadcast %cst_2 : f32 to vector<16x128xf32>
    %16 = arith.minimumf %15, %14 : vector<16x128xf32>
    %17 = math.roundeven %16 : vector<16x128xf32>
    %18 = vector.broadcast %2 : f32 to vector<16x128xf32>
    %19 = arith.mulf %17, %18 : vector<16x128xf32>
    %20 = vector.broadcast %3 : f32 to vector<16x128xf32>
    %21 = arith.addf %19, %20 : vector<16x128xf32>
    %22 = arith.negf %21 : vector<16x128xf32>
    %23 = math.exp %22 : vector<16x128xf32>
    %cst_3 = arith.constant 1.000000e+00 : f32
    %24 = vector.broadcast %cst_3 : f32 to vector<16x128xf32>
    %25 = arith.addf %24, %23 : vector<16x128xf32>
    %26 = arith.divf %24, %25 : vector<16x128xf32>
    %27 = vector.broadcast %4 : f32 to vector<16x128xf32>
    %28 = arith.mulf %26, %27 : vector<16x128xf32>
    %29 = vector.broadcast %5 : f32 to vector<16x128xf32>
    %30 = arith.addf %29, %28 : vector<16x128xf32>
    %cst_4 = arith.constant 0.000000e+00 : f32
    %cst_5 = arith.constant 2.550000e+02 : f32
    %31 = vector.broadcast %cst_4 : f32 to vector<16x128xf32>
    %32 = arith.maximumf %31, %30 : vector<16x128xf32>
    %33 = vector.broadcast %cst_5 : f32 to vector<16x128xf32>
    %34 = arith.minimumf %33, %32 : vector<16x128xf32>
    %35 = math.roundeven %34 : vector<16x128xf32>
    %36 = vector.broadcast %6 : f32 to vector<16x128xf32>
    %37 = arith.mulf %35, %36 : vector<16x128xf32>
    %38 = vector.broadcast %7 : f32 to vector<16x128xf32>
    %39 = arith.addf %37, %38 : vector<16x128xf32>
    %c0_6 = arith.constant 0 : index
    %c0_7 = arith.constant 0 : index
    %40 = vector.load %arg3[%c0_6, %c0_7] : memref<16x128xf32, #tpu.memory_space<vmem>>, vector<16x128xf32>
    tpu.vector_store %arg3[%c0_6, %c0_7], %39 {strides = array<i32>} : memref<16x128xf32, #tpu.memory_space<vmem>>, vector<16x128xf32>,
    return
  }
  func.func @transform_0(%arg0: i32, %arg1: memref<8xf32, #tpu.memory_space<smem>>) -> (i32, i32) {
    %c0_i32 = arith.constant 0 : i32
    %c0_i32_0 = arith.constant 0 : i32
    return %arg0, %c0_i32 : i32, i32
  }
  func.func @transform_1(%arg0: i32, %arg1: memref<8xf32, #tpu.memory_space<smem>>) -> (i32, i32) {
    %c0_i32 = arith.constant 0 : i32
    %c0_i32_0 = arith.constant 0 : i32
    return %arg0, %c0_i32 : i32, i32
  }
}

</mosaic_0001>

<bundles_post_ra>
// kernel: qsigmoid_forward.2
= control target key start
LH: loop header
LB: loop body
LE: loop exit
PB: predicated region body
PF: predicated region fallthrough
CT: control target
= control target key end

     0   :  { %s63_s0 = inlined_call_operand.vmem [shape: f32[16,128], index: 0, kind: input, shape index: {}]   ;;  %s64_s1 = inlined_call_operand.vmem [shape: f32[8,128], index: 1, kind: output, shape index: {0}]   ;;  %s65_s2 = inlined_call_operand.vmem [shape: f32[8,128], index: 2, kind: output, shape index: {1}]  }
   0x1   :  { %v16_v0 = vld [vmem:[%s63_s0] sm:$0xff]  ;;  %v17_v1 = vld [vmem:[%s63_s0 + $0x8] sm:$0xff] }
   0x2   :  { %v19_v2 = vmin.f32 %v16_v0, %v17_v1  ;;  %v23_v3 = vmax.f32 %v16_v0, %v17_v1 }
   0x4   :  { %21 = vst [vmem:[%s64_s1] sm:$0xff] %v19_v2 }
   0x5   :  { %25 = vst [vmem:[%s65_s2] sm:$0xff] %v23_v3 }

// kernel: qsigmoid_forward.3
= control target key start
LH: loop header
LB: loop body
LE: loop exit
PB: predicated region body
PF: predicated region fallthrough
CT: control target
= control target key end

     0   :  { %s171_s12 = smov [#allocation3]   ;;  %s208_s0 = inlined_call_operand.vmem [shape: f32[8], index: 0, kind: input, shape index: {}]   ;;  %s209_s1 = inlined_call_operand.vmem [shape: f32[16,128], index: 1, kind: input, shape index: {}]   ;;  %s210_s2 = inlined_call_operand.vmem [shape: f32[16,128], index: 2, kind: output, shape index: {}]  }
   0x1   :  { %s8_s11 = sshll.u32 %s208_s0, 4  ;;  %s9_s11 = int_to_ptr.vmem [resolvable:$true] %s8_s11 }
   0x2   :  { %11 = dma.vmem_to_smem %s9_s11, 16, %s171_s12, [#allocation2] }
   0x3   :  { %169 = dma.done.wait [#allocation2], 16 }
   0x4   :  { %170 = vsyncadd [#allocation2], 4294967280 }
   0x5   :  { %14 = sfence }
   0x6   :  { %s17_s13 = sld [smem:[#allocation3]]  ;;  %v25_v0 = vld [vmem:[%s209_s1] sm:$0xff]  ;;  %v26_v1 = vld [vmem:[%s209_s1 + $0x8] sm:$0xff] }
   0x7   :  { %s107_s14 = sld [smem:[#allocation3 + $0x1]] }
   0x8   :  { %s108_s0 = sld [smem:[#allocation3 + $0x2]] }
   0x9   :  { %s109_s19 = sld [smem:[#allocation3 + $0x3]] }
   0xa   :  { %s196_s1 = sld [smem:[#allocation3 + $0x4]] }
   0xb   :  { %s198_s20 = sld [smem:[#allocation3 + $0x5]] }
   0xc   :  { %v27_v2 = vstv %s17_s13  ;;  %s112_s21 = sld [smem:[#allocation3 + $0x6]] }
   0xd   :  { %v28_v3 = vmul.f32 %v27_v2, %v25_v0  ;;  %v30_v4 = vstv %s107_s14  ;;  %v29_v5 = vmul.f32 %v27_v2, %v26_v1  ;;  %s113_s22 = sld [smem:[#allocation3 + $0x7]] }
   0xe   :  { %v39_v23 = vstv %s108_s0 }
   0xf   :  { %v31_v6 = vadd.f32 %v30_v4, %v28_v3  ;;  %v32_v7 = vadd.f32 %v30_v4, %v29_v5  ;;  %v42_v26 = vstv %s109_s19 }
  0x10   :  { %v83_v53 = vstv %s196_s1 }
  0x11   :  { %v33_v8 = vmax.f32 %v31_v6, 0.0  ;;  %v34_v9 = vmax.f32 %v32_v7, 0.0  ;;  %v86_v57 = vstv %s198_s20 }
  0x13   :  { %v35_v10 = vmin.f32 %v33_v8, 255.0  ;;  %v36_v11 = vmin.f32 %v34_v9, 255.0 }
  0x15   :  { %v118_v12 = vcvt.f32.s32 %v35_v10  ;;  %v116_v13 = vand.u32 2147483647, %v35_v10  ;;  %v126_v14 = vcvt.f32.s32 %v36_v11  ;;  %v121_v16 = vand.u32 2147483648, %v35_v10 }
  0x16   :  { %v124_v17 = vand.u32 2147483647, %v36_v11  ;;  %v129_v19 = vand.u32 2147483648, %v36_v11 }
  0x17   :  { %v119_v15 = vcvt.s32.f32 %v118_v12  ;;  %v127_v18 = vcvt.s32.f32 %v126_v14  ;;  %vm117_vm0 = vcmp.lt.f32.partialorder %v116_v13, 8388608.0 }
  0x18   :  { %vm125_vm1 = vcmp.lt.f32.partialorder %v124_v17, 8388608.0 }
  0x19   :  { %v120_v20 = vand.u32 2147483647, %v119_v15  ;;  %v128_v21 = vand.u32 2147483647, %v127_v18  ;;  %v95_v15 = vstv %s112_s21  ;;  %v98_v18 = vstv %s113_s22 }
  0x1b   :  { %v122_v22 = vor.u32 %v121_v16, %v120_v20  ;;  %v130_v24 = vor.u32 %v129_v19, %v128_v21 }
  0x1d   :  { %v123_v25 = vsel %vm117_vm0, %v122_v22, %v35_v10  ;;  %v131_v28 = vsel %vm125_vm1, %v130_v24, %v36_v11 }
  0x1e   :  { %v40_v27 = vmul.f32 %v123_v25, %v39_v23  ;;  %v41_v29 = vmul.f32 %v131_v28, %v39_v23 }
  0x20   :  { %v43_v30 = vadd.f32 %v42_v26, %v40_v27  ;;  %v44_v31 = vadd.f32 %v42_v26, %v41_v29 }
  0x22   :  { %v114_v32 = vmul.f32 -1.442695, %v43_v30  ;;  %v115_v33 = vmul.f32 -1.442695, %v44_v31 }
  0x24   :  { %149 = vpow2.f32 %v114_v32 }
  0x25   :  { %151 = vpow2.f32 %v115_v33 }
  0x2a   :  { %v150_v34 = vpop.eup %149 }
  0x2b   :  { %v152_v35 = vpop.eup %151  ;;  %v51_v36 = vadd.f32 1.0, %v150_v34 }
  0x2c   :  { %v52_v37 = vadd.f32 1.0, %v152_v35 }
  0x2d   :  { %153 = vrcp.f32 %v51_v36  ;;  %vm58_vm2 = vweird.f32 %v51_v36  ;;  %v64_v41 = vand.u32 2147483648, %v51_v36  ;;  %v62_v44 = vand.u32 2147483647, %v51_v36 }
  0x2e   :  { %155 = vrcp.f32 %v52_v37  ;;  %v79_v45 = vand.u32 2147483648, %v52_v37  ;;  %vm73_vm4 = vweird.f32 %v52_v37  ;;  %v77_v47 = vand.u32 2147483647, %v52_v37 }
  0x2f   :  { %v65_v49 = vor.u32 1.1754944e-38, %v64_v41  ;;  %vm63_vm7 = vcmp.eq.f32.partialorder %v62_v44, 8.507059e+37 }
  0x30   :  { %v80_v52 = vor.u32 1.1754944e-38, %v79_v45  ;;  %vm78_vm9 = vcmp.eq.f32.partialorder %v77_v47, 8.507059e+37 }
  0x33   :  { %v154_v38 = vpop.eup %153 }
  0x34   :  { %v156_v39 = vpop.eup %155  ;;  %v54_v40 = vmul.f32 %v154_v38, %v51_v36  ;;  %vm59_vm3 = vweird.f32 %v154_v38 }
  0x35   :  { %v69_v42 = vmul.f32 %v156_v39, %v52_v37  ;;  %vm74_vm5 = vweird.f32 %v156_v39  ;;  %vm60_vm6 = vmor %vm58_vm2, %vm59_vm3 }
  0x36   :  { %v55_v43 = vsub.f32 1.0, %v54_v40  ;;  %vm75_vm8 = vmor %vm73_vm4, %vm74_vm5 }
  0x37   :  { %v70_v46 = vsub.f32 1.0, %v69_v42 }
  0x38   :  { %v56_v48 = vmul.f32 %v154_v38, %v55_v43 }
  0x39   :  { %v71_v50 = vmul.f32 %v156_v39, %v70_v46 }
  0x3a   :  { %v57_v51 = vadd.f32 %v154_v38, %v56_v48 }
  0x3b   :  { %v72_v54 = vadd.f32 %v156_v39, %v71_v50 }
  0x3c   :  { %v61_v55 = vsel %vm60_vm6, %v154_v38, %v57_v51 }
  0x3d   :  { %v66_v56 = vsel %vm63_vm7, %v65_v49, %v61_v55  ;;  %v76_v58 = vsel %vm75_vm8, %v156_v39, %v72_v54 }
  0x3e   :  { %v84_v59 = vmul.f32 %v83_v53, %v66_v56  ;;  %v81_v60 = vsel %vm78_vm9, %v80_v52, %v76_v58 }
  0x3f   :  { %v85_v61 = vmul.f32 %v83_v53, %v81_v60 }
  0x40   :  { %v87_v62 = vadd.f32 %v86_v57, %v84_v59 }
  0x41   :  { %v88_v63 = vadd.f32 %v86_v57, %v85_v61 }
  0x42   :  { %v89_v0 = vmax.f32 %v87_v62, 0.0 }
  0x43   :  { %v90_v1 = vmax.f32 %v88_v63, 0.0 }
  0x44   :  { %v91_v2 = vmin.f32 %v89_v0, 255.0 }
  0x45   :  { %v92_v3 = vmin.f32 %v90_v1, 255.0 }
  0x46   :  { %v134_v4 = vcvt.f32.s32 %v91_v2  ;;  %v132_v5 = vand.u32 2147483647, %v91_v2  ;;  %v137_v8 = vand.u32 2147483648, %v91_v2 }
  0x47   :  { %v142_v6 = vcvt.f32.s32 %v92_v3  ;;  %v140_v9 = vand.u32 2147483647, %v92_v3  ;;  %v145_v11 = vand.u32 2147483648, %v92_v3 }
  0x48   :  { %v135_v7 = vcvt.s32.f32 %v134_v4  ;;  %vm133_vm10 = vcmp.lt.f32.partialorder %v132_v5, 8388608.0 }
  0x49   :  { %v143_v10 = vcvt.s32.f32 %v142_v6  ;;  %vm141_vm11 = vcmp.lt.f32.partialorder %v140_v9, 8388608.0 }
  0x4a   :  { %v136_v12 = vand.u32 2147483647, %v135_v7 }
  0x4b   :  { %v144_v13 = vand.u32 2147483647, %v143_v10 }
  0x4c   :  { %v138_v14 = vor.u32 %v137_v8, %v136_v12 }
  0x4d   :  { %v146_v16 = vor.u32 %v145_v11, %v144_v13 }
  0x4e   :  { %v139_v17 = vsel %vm133_vm10, %v138_v14, %v91_v2 }
  0x4f   :  { %v96_v19 = vmul.f32 %v139_v17, %v95_v15  ;;  %v147_v20 = vsel %vm141_vm11, %v146_v16, %v92_v3 }
  0x50   :  { %v97_v21 = vmul.f32 %v147_v20, %v95_v15 }
  0x51   :  { %v99_v22 = vadd.f32 %v98_v18, %v96_v19 }
  0x52   :  { %v100_v23 = vadd.f32 %v98_v18, %v97_v21 }
  0x53   :  { %101 = vst [vmem:[%s210_s2] sm:$0xff] %v99_v22 }
  0x54   :  { %102 = vst [vmem:[%s210_s2 + $0x8] sm:$0xff] %v100_v23 }

</bundles_post_ra>
